<compile_context>
chip_gen: v7x
topology: tpu7x:2x2x1
jax: 0.10.0
libtpu: 0.0.40
codegen_flags: <defaults>
</compile_context>

<pallas_src>
import functools

import jax
import jax.numpy as jnp
from jax.experimental import pallas as pl
from jax.experimental.pallas import tpu as pltpu

_LANES = 128


def _dice_kernel(p_ref, t_ref, o_ref, num_acc, den_acc, *, hw, s_blk,
                 needs_mask):
    """p_ref/t_ref: (C, s_blk, 128) tiles.  o_ref: (2, 128) per-(b, jo) pair.
    num_acc/den_acc: (s_blk, 128) VMEM per-lane accumulators, resident across
    the inner row-tile axis."""
    ji = pl.program_id(2)

    @pl.when(ji == 0)
    def _():
        num_acc[...] = jnp.zeros_like(num_acc)
        den_acc[...] = jnp.zeros_like(den_acc)

    x = p_ref[...].astype(jnp.float32)      # (C, s_blk, 128)
    t = t_ref[...].astype(jnp.float32)

    # Channel softmax without materializing probs.  Reductions over the
    # leading C axis are elementwise combines of dense (s_blk, 128) slabs.
    m = jnp.max(x, axis=0, keepdims=True)
    e = jnp.exp(x - m)                      # e <= 1, no overflow
    z = jnp.sum(e, axis=0)                  # (s_blk, 128)
    rz = pl.reciprocal(z, approx=False)     # exact; one per column, cheap

    num_col = rz * jnp.sum(e * t, axis=0)
    den_col = rz * rz * jnp.sum(e * e, axis=0) + jnp.sum(t * t, axis=0)

    if needs_mask:
        # Zero the contribution of padded / out-of-bounds columns.  A
        # where-select (not a multiply) so NaN/Inf garbage cannot propagate.
        jo = pl.program_id(1)
        nji = pl.num_programs(2)
        row0 = (jo * nji + ji) * s_blk
        rows = jax.lax.broadcasted_iota(jnp.int32, (s_blk, _LANES), 0)
        lanes = jax.lax.broadcasted_iota(jnp.int32, (s_blk, _LANES), 1)
        valid = (row0 + rows) * _LANES + lanes < hw
        num_col = jnp.where(valid, num_col, 0.0)
        den_col = jnp.where(valid, den_col, 0.0)

    # Dense full-slab accumulator updates (no sublane-masked partial stores).
    num_acc[...] += num_col
    den_acc[...] += den_col

    @pl.when(ji == pl.num_programs(2) - 1)
    def _():
        num_b = jnp.sum(num_acc[...])
        den_b = jnp.sum(den_acc[...])
        # TODO(synk): the torch forward does `print(num)`; host-side printing
        # of a runtime tensor has no clean in-kernel equivalent outside
        # interpret mode, so it is omitted.
        ones = jnp.ones((1, _LANES), jnp.float32)
        o_ref[...] = jnp.concatenate([num_b * ones, den_b * ones], axis=0)


def _pick_rows(num_channels, s_total, itemsize, budget_bytes=12 << 20,
               max_rows=512):
    """Largest row tile (multiple of 8, or the full row count) such that two
    double-buffered (C, rows, 128) inputs plus the two (rows, 128) f32
    accumulators fit the VMEM budget.  12 MiB fits the smallest default
    scoped VMEM (v5e 16 MiB) with headroom; v6e/v7x have 32 MiB scoped."""
    per_row = 2 * 2 * num_channels * _LANES * itemsize + 2 * _LANES * 4
    cap = budget_bytes // per_row
    cap = max(8, min((cap // 8) * 8, max_rows))
    if s_total <= cap:
        return s_total          # full extent: always a legal block dim
    return cap                  # multiple of 8: legal; remainder is masked


def dice_loss(predict, target, block_rows=None):
    """predict, target: (B, C, H, W) arrays (f32 or bf16). Returns scalar f32."""
    assert predict.shape == target.shape, "predict & target shape do not match"
    B, C, H, W = predict.shape
    HW = H * W

    # Free views: NCHW -> (B, C, H*W); no transpose, no extra HBM pass.
    p3 = predict.reshape(B, C, HW)
    t3 = target.reshape(B, C, HW)

    s_total = pl.cdiv(HW, _LANES)
    hw_pad = s_total * _LANES
    if hw_pad != HW:
        # One extra copy, only for spatial sizes that are not a multiple of
        # 128; padded columns are masked out inside the kernel so they cannot
        # inflate the denominator.
        pad = ((0, 0), (0, 0), (0, hw_pad - HW))
        p3 = jnp.pad(p3, pad)
        t3 = jnp.pad(t3, pad)
    p4 = p3.reshape(B, C, s_total, _LANES)
    t4 = t3.reshape(B, C, s_total, _LANES)

    itemsize = max(jnp.dtype(predict.dtype).itemsize,
                   jnp.dtype(target.dtype).itemsize)
    s_blk = block_rows if block_rows is not None else _pick_rows(
        C, s_total, itemsize)

    nj = pl.cdiv(s_total, s_blk)
    # v7x megacore: with B == 1 the batch axis cannot feed the 2nd TensorCore,
    # so split the row-tile axis into a parallel outer half when it divides
    # evenly.  Neutral on v5e/v6e (single TC).
    if B == 1 and nj % 2 == 0:
        njo, nji = 2, nj // 2
    else:
        njo, nji = 1, nj

    needs_mask = (njo * nji * s_blk * _LANES) != HW

    # Raise scoped VMEM only if the chosen tile needs it; cap well below
    # v7x's 64 MiB physical VMEM to leave room for compiler temps.
    needed = (2 * 2 * C * s_blk * _LANES * itemsize
              + 2 * s_blk * _LANES * 4 + (2 << 20))
    vmem_limit = int(min(needed, 44 << 20)) if needed > (14 << 20) else None

    kernel = functools.partial(_dice_kernel, hw=HW, s_blk=s_blk,
                               needs_mask=needs_mask)

    out = pl.pallas_call(
        kernel,
        out_shape=jax.ShapeDtypeStruct((B, njo, 2, _LANES), jnp.float32),
        grid_spec=pltpu.PrefetchScalarGridSpec(
            num_scalar_prefetch=0,
            grid=(B, njo, nji),
            in_specs=[
                pl.BlockSpec((None, C, s_blk, _LANES),
                             lambda b, jo, ji: (b, 0, jo * nji + ji, 0)),
                pl.BlockSpec((None, C, s_blk, _LANES),
                             lambda b, jo, ji: (b, 0, jo * nji + ji, 0)),
            ],
            out_specs=pl.BlockSpec((None, None, 2, _LANES),
                                   lambda b, jo, ji: (b, jo, 0, 0)),
            scratch_shapes=[
                pltpu.VMEM((s_blk, _LANES), jnp.float32),   # num partials
                pltpu.VMEM((s_blk, _LANES), jnp.float32),   # denum partials
            ],
        ),
        compiler_params=pltpu.CompilerParams(
            dimension_semantics=("parallel", "parallel", "arbitrary"),
            vmem_limit_bytes=vmem_limit,
        ),
    )(p4, t4)

    num = jnp.sum(out[:, :, 0, 0])
    denum = jnp.sum(out[:, :, 1, 0])
    return 1.0 - 2.0 * num / denum


def _dice_loss_ref(predict, target):
    """Pure-JAX reference mirroring the PyTorch forward."""
    probs = jax.nn.softmax(predict.astype(jnp.float32), axis=1)
    t = target.astype(jnp.float32)
    num = jnp.sum(probs * t)
    denum = jnp.sum(probs ** 2) + jnp.sum(t ** 2)
    return 1.0 - 2.0 * num / denum


if __name__ == "__main__":
    key = jax.random.PRNGKey(0)
    k1, k2, k3, k4 = jax.random.split(key, 4)

    # Main test: B=2, C=4, 16x16 spatial (HW a multiple of 128: no masking).
    B, C, H, W = 2, 4, 16, 16
    predict = jax.random.normal(k1, (B, C, H, W), dtype=jnp.float32)
    labels = jax.random.randint(k2, (B, H, W), 0, C)
    target = jnp.transpose(jax.nn.one_hot(labels, C, dtype=jnp.float32),
                           (0, 3, 1, 2))                       # (B, C, H, W)

    loss = jax.block_until_ready(jax.jit(dice_loss)(predict, target))
    ref = jax.block_until_ready(_dice_loss_ref(predict, target))
    assert jnp.allclose(loss, ref, atol=1e-5, rtol=1e-5), (loss, ref)

    # Second shape: HW=100 exercises the lane-pad + in-kernel masking path.
    B2, C2, H2, W2 = 2, 4, 10, 10
    predict2 = jax.random.normal(k3, (B2, C2, H2, W2), dtype=jnp.float32)
    labels2 = jax.random.randint(k4, (B2, H2, W2), 0, C2)
    target2 = jnp.transpose(jax.nn.one_hot(labels2, C2, dtype=jnp.float32),
                            (0, 3, 1, 2))

    loss2 = jax.block_until_ready(jax.jit(dice_loss)(predict2, target2))
    ref2 = jax.block_until_ready(_dice_loss_ref(predict2, target2))
    assert jnp.allclose(loss2, ref2, atol=1e-5, rtol=1e-5), (loss2, ref2)

    print("KERNEL_OK")
</pallas_src>

<mosaic_0001>
module attributes {stable_mosaic.version = 11 : i64} {
  func.func @_dice_kernel(%arg0: i32, %arg1: i32, %arg2: i32, %arg3: memref<1x4x2x128xf32, #tpu.memory_space<vmem>>, %arg4: memref<1x4x2x128xf32, #tpu.memory_space<vmem>>, %arg5: memref<1x1x2x128xf32, #tpu.memory_space<vmem>>, %arg6: memref<2x128xf32, #tpu.memory_space<vmem>>, %arg7: memref<2x128xf32, #tpu.memory_space<vmem>>) attributes {dimension_semantics = [#tpu.dimension_semantics<parallel>, #tpu.dimension_semantics<parallel>, #tpu.dimension_semantics<arbitrary>], iteration_bounds = array<i64: 2, 1, 1>, scalar_prefetch = 0 : i64, scratch_operands = 2 : i64, tpu.core_type = #tpu.core_type<tc>, window_params = [{transform_indices = @transform_0, window_bounds = array<i64: 1, 4, 2, 128>}, {transform_indices = @transform_1, window_bounds = array<i64: 1, 4, 2, 128>}, {transform_indices = @transform_2, window_bounds = array<i64: 1, 1, 2, 128>}]} {
    %c0_i32 = arith.constant 0 : i32
    %0 = arith.cmpi eq, %arg2, %c0_i32 : i32
    %1 = arith.extui %0 : i1 to i32
    %c0_i32_0 = arith.constant 0 : i32
    %2 = arith.cmpi ne, %1, %c0_i32_0 : i32
    scf.if %2 {
      %cst_22 = arith.constant 0.000000e+00 : f32
      %33 = vector.broadcast %cst_22 : f32 to vector<2x128xf32>
      %c0_23 = arith.constant 0 : index
      %c0_24 = arith.constant 0 : index
      %34 = vector.load %arg6[%c0_23, %c0_24] : memref<2x128xf32, #tpu.memory_space<vmem>>, vector<2x128xf32>
      tpu.vector_store %arg6[%c0_23, %c0_24], %33 {strides = array<i32>} : memref<2x128xf32, #tpu.memory_space<vmem>>, vector<2x128xf32>,
      %cst_25 = arith.constant 0.000000e+00 : f32
      %35 = vector.broadcast %cst_25 : f32 to vector<2x128xf32>
      %c0_26 = arith.constant 0 : index
      %c0_27 = arith.constant 0 : index
      %36 = vector.load %arg7[%c0_26, %c0_27] : memref<2x128xf32, #tpu.memory_space<vmem>>, vector<2x128xf32>
      tpu.vector_store %arg7[%c0_26, %c0_27], %35 {strides = array<i32>} : memref<2x128xf32, #tpu.memory_space<vmem>>, vector<2x128xf32>,
    } else {
    }
    %c0 = arith.constant 0 : index
    %c0_1 = arith.constant 0 : index
    %c0_2 = arith.constant 0 : index
    %c0_3 = arith.constant 0 : index
    %3 = vector.load %arg3[%c0, %c0_1, %c0_2, %c0_3] : memref<1x4x2x128xf32, #tpu.memory_space<vmem>>, vector<1x4x2x128xf32>
    %4 = vector.shape_cast %3 : vector<1x4x2x128xf32> to vector<4x2x128xf32>
    %c0_4 = arith.constant 0 : index
    %c0_5 = arith.constant 0 : index
    %c0_6 = arith.constant 0 : index
    %c0_7 = arith.constant 0 : index
    %5 = vector.load %arg4[%c0_4, %c0_5, %c0_6, %c0_7] : memref<1x4x2x128xf32, #tpu.memory_space<vmem>>, vector<1x4x2x128xf32>
    %6 = vector.shape_cast %5 : vector<1x4x2x128xf32> to vector<4x2x128xf32>
    %cst = arith.constant dense<0xFF800000> : vector<2x128xf32>
    %7 = vector.multi_reduction <maximumf>, %4, %cst [0] : vector<4x2x128xf32> to vector<2x128xf32>
    %8 = vector.shape_cast %7 : vector<2x128xf32> to vector<1x2x128xf32>
    %9 = vector.broadcast %8 : vector<1x2x128xf32> to vector<4x2x128xf32>
    %10 = arith.subf %4, %9 : vector<4x2x128xf32>
    %11 = math.exp %10 : vector<4x2x128xf32>
    %cst_8 = arith.constant dense<0.000000e+00> : vector<2x128xf32>
    %12 = vector.multi_reduction <add>, %11, %cst_8 [0] : vector<4x2x128xf32> to vector<2x128xf32>
    %13 = tpu.reciprocal %12 : vector<2x128xf32> -> vector<2x128xf32>
    %14 = arith.mulf %11, %6 : vector<4x2x128xf32>
    %cst_9 = arith.constant dense<0.000000e+00> : vector<2x128xf32>
    %15 = vector.multi_reduction <add>, %14, %cst_9 [0] : vector<4x2x128xf32> to vector<2x128xf32>
    %16 = arith.mulf %13, %15 : vector<2x128xf32>
    %17 = arith.mulf %13, %13 : vector<2x128xf32>
    %18 = arith.mulf %11, %11 : vector<4x2x128xf32>
    %cst_10 = arith.constant dense<0.000000e+00> : vector<2x128xf32>
    %19 = vector.multi_reduction <add>, %18, %cst_10 [0] : vector<4x2x128xf32> to vector<2x128xf32>
    %20 = arith.mulf %17, %19 : vector<2x128xf32>
    %21 = arith.mulf %6, %6 : vector<4x2x128xf32>
    %cst_11 = arith.constant dense<0.000000e+00> : vector<2x128xf32>
    %22 = vector.multi_reduction <add>, %21, %cst_11 [0] : vector<4x2x128xf32> to vector<2x128xf32>
    %23 = arith.addf %20, %22 : vector<2x128xf32>
    %c0_12 = arith.constant 0 : index
    %c0_13 = arith.constant 0 : index
    %24 = vector.load %arg6[%c0_12, %c0_13] : memref<2x128xf32, #tpu.memory_space<vmem>>, vector<2x128xf32>
    %25 = arith.addf %24, %16 : vector<2x128xf32>
    %c0_14 = arith.constant 0 : index
    %c0_15 = arith.constant 0 : index
    %26 = vector.load %arg6[%c0_14, %c0_15] : memref<2x128xf32, #tpu.memory_space<vmem>>, vector<2x128xf32>
    tpu.vector_store %arg6[%c0_14, %c0_15], %25 {strides = array<i32>} : memref<2x128xf32, #tpu.memory_space<vmem>>, vector<2x128xf32>,
    %c0_16 = arith.constant 0 : index
    %c0_17 = arith.constant 0 : index
    %27 = vector.load %arg7[%c0_16, %c0_17] : memref<2x128xf32, #tpu.memory_space<vmem>>, vector<2x128xf32>
    %28 = arith.addf %27, %23 : vector<2x128xf32>
    %c0_18 = arith.constant 0 : index
    %c0_19 = arith.constant 0 : index
    %29 = vector.load %arg7[%c0_18, %c0_19] : memref<2x128xf32, #tpu.memory_space<vmem>>, vector<2x128xf32>
    tpu.vector_store %arg7[%c0_18, %c0_19], %28 {strides = array<i32>} : memref<2x128xf32, #tpu.memory_space<vmem>>, vector<2x128xf32>,
    %c0_i32_20 = arith.constant 0 : i32
    %30 = arith.cmpi eq, %arg2, %c0_i32_20 : i32
    %31 = arith.extui %30 : i1 to i32
    %c0_i32_21 = arith.constant 0 : i32
    %32 = arith.cmpi ne, %31, %c0_i32_21 : i32
    scf.if %32 {
      %c0_22 = arith.constant 0 : index
      %c0_23 = arith.constant 0 : index
      %33 = vector.load %arg6[%c0_22, %c0_23] : memref<2x128xf32, #tpu.memory_space<vmem>>, vector<2x128xf32>
      %34 = vector.shape_cast %33 : vector<2x128xf32> to vector<1x2x128xf32>
      %cst_24 = arith.constant dense<0.000000e+00> : vector<1xf32>
      %35 = vector.multi_reduction <add>, %34, %cst_24 [1, 2] : vector<1x2x128xf32> to vector<1xf32>
      %36 = vector.shape_cast %35 : vector<1xf32> to vector<1x1x1xf32>
      %37 = vector.extract %36[0, 0, 0] : f32 from vector<1x1x1xf32>
      %c0_25 = arith.constant 0 : index
      %c0_26 = arith.constant 0 : index
      %38 = vector.load %arg7[%c0_25, %c0_26] : memref<2x128xf32, #tpu.memory_space<vmem>>, vector<2x128xf32>
      %39 = vector.shape_cast %38 : vector<2x128xf32> to vector<1x2x128xf32>
      %cst_27 = arith.constant dense<0.000000e+00> : vector<1xf32>
      %40 = vector.multi_reduction <add>, %39, %cst_27 [1, 2] : vector<1x2x128xf32> to vector<1xf32>
      %41 = vector.shape_cast %40 : vector<1xf32> to vector<1x1x1xf32>
      %42 = vector.extract %41[0, 0, 0] : f32 from vector<1x1x1xf32>
      %cst_28 = arith.constant 1.000000e+00 : f32
      %43 = vector.broadcast %cst_28 : f32 to vector<1x128xf32>
      %44 = vector.broadcast %37 : f32 to vector<1x128xf32>
      %45 = arith.mulf %44, %43 : vector<1x128xf32>
      %46 = vector.broadcast %42 : f32 to vector<1x128xf32>
      %47 = arith.mulf %46, %43 : vector<1x128xf32>
      %48 = tpu.concatenate %45, %47 in 0 : vector<1x128xf32>, vector<1x128xf32> -> vector<2x128xf32>
      %c0_29 = arith.constant 0 : index
      %c0_30 = arith.constant 0 : index
      %c0_31 = arith.constant 0 : index
      %c0_32 = arith.constant 0 : index
      %49 = vector.load %arg5[%c0_29, %c0_30, %c0_31, %c0_32] : memref<1x1x2x128xf32, #tpu.memory_space<vmem>>, vector<1x1x2x128xf32>
      %50 = vector.shape_cast %49 : vector<1x1x2x128xf32> to vector<2x128xf32>
      %51 = vector.shape_cast %48 : vector<2x128xf32> to vector<1x1x2x128xf32>
      tpu.vector_store %arg5[%c0_29, %c0_30, %c0_31, %c0_32], %51 {strides = array<i32>} : memref<1x1x2x128xf32, #tpu.memory_space<vmem>>, vector<1x1x2x128xf32>,
    } else {
    }
    return
  }
  func.func @transform_0(%arg0: i32, %arg1: i32, %arg2: i32) -> (i32, i32, i32, i32) {
    %c1_i32 = arith.constant 1 : i32
    %0 = arith.muli %arg1, %c1_i32 : i32
    %1 = arith.addi %0, %arg2 : i32
    %c0_i32 = arith.constant 0 : i32
    %c0_i32_0 = arith.constant 0 : i32
    %c0_i32_1 = arith.constant 0 : i32
    return %arg0, %c0_i32, %1, %c0_i32_0 : i32, i32, i32, i32
  }
  func.func @transform_1(%arg0: i32, %arg1: i32, %arg2: i32) -> (i32, i32, i32, i32) {
    %c1_i32 = arith.constant 1 : i32
    %0 = arith.muli %arg1, %c1_i32 : i32
    %1 = arith.addi %0, %arg2 : i32
    %c0_i32 = arith.constant 0 : i32
    %c0_i32_0 = arith.constant 0 : i32
    %c0_i32_1 = arith.constant 0 : i32
    return %arg0, %c0_i32, %1, %c0_i32_0 : i32, i32, i32, i32
  }
  func.func @transform_2(%arg0: i32, %arg1: i32, %arg2: i32) -> (i32, i32, i32, i32) {
    %c0_i32 = arith.constant 0 : i32
    %c0_i32_0 = arith.constant 0 : i32
    %c0_i32_1 = arith.constant 0 : i32
    return %arg0, %arg1, %c0_i32, %c0_i32_0 : i32, i32, i32, i32
  }
}

</mosaic_0001>

<bundles_post_ra>
// kernel: dice_loss.1
= control target key start
LH: loop header
LB: loop body
LE: loop exit
PB: predicated region body
PF: predicated region fallthrough
CT: control target
= control target key end

     0   :  { %s531_s9 = smov 0   ;;  %s533_s10 = smov 0   ;;  %s593_s0 = inlined_call_operand.vmem [shape: f32[2,4,2,128], index: 0, kind: input, shape index: {}]   ;;  %s594_s1 = inlined_call_operand.vmem [shape: f32[2,4,2,128], index: 1, kind: input, shape index: {}]   ;;  %s595_s2 = inlined_call_operand.vmem [shape: f32[2,1,2,128], index: 2, kind: output, shape index: {}]  }
   0x1   :  { %s535_s11 = smov 0  }
   0x2 LB: > { %s31_s12 = sadd.s32 1, %s509_s10  ;;  %p442_p0 = scmp.ge.s32.totalorder %s513_s11, 1  ;;  %s513_s11 = sphi %s535_s11, %s12_s11   ;;  %s509_s10 = sphi %s533_s10, %s597_s10   ;;  %s505_s9 = sphi %s531_s9, %s596_s9  }
   0x3   : > { %p33_p1 = scmp.ge.s32.totalorder %s31_s12, 2  ;;  %p161_p2 = scmp.lt.s32.totalorder %s513_s11, 3 }
   0x5   : > { %s599_s12 = smov (%p33_p1, %s31_s12), 0  ;;  %p162_p3 = pnand %p442_p0, %p161_p2 }
   0x6   : > { %p199_p4 = scmp.lt.s32.totalorder (!%p162_p3), %s505_s9, 1  ;;  %v515_v0 = vmov (!%p162_p3), 0.0   ;;  %vm239_vm0 = vcmask (!%p162_p3), 1041408   ;;  %vm337_vm1 = vcmask (!%p162_p3), 1040384  }
   0x7   : > { %165 = sbr.rel (%p162_p3) target bundleno = 282 (0x11a), region = 28  ;;  %229 = vst [vmem:[#allocation2] sm:$0x3] (!%p162_p3), %v515_v0  ;;  %230 = vst [vmem:[#allocation3] sm:$0x3] (!%p162_p3), %v515_v0 }
   0xe   : > { %s601_s9 = smov (!%p199_p4, %s505_s9), 1 }
   0xf   : > { %s450_s13 = sshll.u32 %s601_s9, 3  ;;  %s447_s20 = sshll.u32 %s601_s9, 1 }
  0x10   : > { %s206_s16 = scalar_lea.vmem %s593_s0, %s450_s13  ;;  %s216_s19 = scalar_lea.vmem %s594_s1, %s450_s13 }
  0x11   : > { %v231_v1 = vld [vmem:[%s206_s16] sm:$0x3]  ;;  %v232_v2 = vld [vmem:[%s206_s16 + $0x2] sm:$0x3]  ;;  %v233_v3 = vld [vmem:[%s206_s16 + $0x4] sm:$0x3]  ;;  %s224_s24 = scalar_lea.vmem %s595_s2, %s447_s20 }
  0x12   : > { %v234_v4 = vld [vmem:[%s206_s16 + $0x6] sm:$0x3]  ;;  %v240_v5 = vsel %vm239_vm0, %v231_v1, -inf  ;;  %v241_v6 = vsel %vm239_vm0, %v232_v2, -inf  ;;  %v242_v7 = vsel %vm239_vm0, %v233_v3, -inf }
  0x13   : > { %v243_v8 = vsel %vm239_vm0, %v234_v4, -inf  ;;  %v244_v9 = vmax.f32 %v240_v5, %v241_v6  ;;  %v235_v20 = vld [vmem:[%s216_s19] sm:$0x3]  ;;  %v236_v21 = vld [vmem:[%s216_s19 + $0x2] sm:$0x3] }
  0x14   : > { %v245_v10 = vmax.f32 %v242_v7, %v243_v8  ;;  %v237_v27 = vld [vmem:[%s216_s19 + $0x4] sm:$0x3]  ;;  %v292_v36 = vmul.f32 %v235_v20, %v235_v20  ;;  %v293_v37 = vmul.f32 %v236_v21, %v236_v21  ;;  %v238_v42 = vld [vmem:[%s216_s19 + $0x6] sm:$0x3] }
  0x15   : > { %v294_v48 = vmul.f32 %v237_v27, %v237_v27  ;;  %v295_v59 = vmul.f32 %v238_v42, %v238_v42 }
  0x16   : > { %v246_v11 = vmax.f32 %v244_v9, %v245_v10  ;;  %v296_v49 = vsel %vm239_vm0, %v292_v36, 0.0  ;;  %v297_v52 = vsel %vm239_vm0, %v293_v37, 0.0  ;;  %v307_v10 = vld [vmem:[#allocation3] sm:$0x3] }
  0x17   : > { %v298_v57 = vadd.f32 %v297_v52, %v296_v49  ;;  %v299_v60 = vsel %vm239_vm0, %v294_v48, 0.0 }
  0x18   : > { %v247_v12 = vsub.f32 %v231_v1, %v246_v11  ;;  %v248_v13 = vsub.f32 %v232_v2, %v246_v11  ;;  %v249_v14 = vsub.f32 %v233_v3, %v246_v11  ;;  %v250_v15 = vsub.f32 %v234_v4, %v246_v11  ;;  %v304_v4 = vld [vmem:[#allocation2] sm:$0x3] }
  0x19   : > { %v300_v0 = vadd.f32 %v299_v60, %v298_v57  ;;  %v301_v1 = vsel %vm239_vm0, %v295_v59, 0.0 }
  0x1a   : > { %v251_v16 = vmul.f32 1.442695, %v247_v12  ;;  %v253_v17 = vmul.f32 1.442695, %v248_v13  ;;  %v255_v18 = vmul.f32 1.442695, %v249_v14 }
  0x1b   : > { %v257_v19 = vmul.f32 1.442695, %v250_v15  ;;  %v302_v7 = vadd.f32 %v301_v1, %v300_v0 }
  0x1c   : > { %481 = vpow2.f32 %v251_v16 }
  0x1d   : > { %483 = vpow2.f32 %v253_v17 }
  0x1e   : > { %485 = vpow2.f32 %v255_v18 }
  0x1f   : > { %487 = vpow2.f32 %v257_v19 }
  0x26   : > { %v482_v22 = vpop.eup %481 }
  0x27   : > { %v484_v23 = vpop.eup %483  ;;  %v259_v24 = vsel %vm239_vm0, %v482_v22, 0.0  ;;  %v267_v25 = vmul.f32 %v482_v22, %v235_v20  ;;  %v280_v33 = vmul.f32 %v482_v22, %v482_v22 }
  0x28   : > { %v486_v26 = vpop.eup %485  ;;  %v260_v28 = vsel %vm239_vm0, %v484_v23, 0.0  ;;  %v268_v29 = vmul.f32 %v484_v23, %v236_v21  ;;  %v281_v34 = vmul.f32 %v484_v23, %v484_v23 }
  0x29   : > { %v488_v30 = vpop.eup %487  ;;  %v261_v31 = vadd.f32 %v260_v28, %v259_v24  ;;  %v262_v32 = vsel %vm239_vm0, %v486_v26, 0.0  ;;  %v269_v39 = vmul.f32 %v486_v26, %v237_v27  ;;  %v271_v40 = vsel %vm239_vm0, %v267_v25, 0.0 }
  0x2a   : > { %v264_v35 = vsel %vm239_vm0, %v488_v30, 0.0  ;;  %v272_v41 = vsel %vm239_vm0, %v268_v29, 0.0  ;;  %v282_v44 = vmul.f32 %v486_v26, %v486_v26  ;;  %v284_v45 = vsel %vm239_vm0, %v280_v33, 0.0 }
  0x2b   : > { %v263_v38 = vadd.f32 %v262_v32, %v261_v31  ;;  %v285_v46 = vsel %vm239_vm0, %v281_v34, 0.0  ;;  %v273_v47 = vadd.f32 %v272_v41, %v271_v40  ;;  %v270_v50 = vmul.f32 %v488_v30, %v238_v42 }
  0x2c   : > { %v274_v51 = vsel %vm239_vm0, %v269_v39, 0.0  ;;  %v286_v53 = vadd.f32 %v285_v46, %v284_v45  ;;  %v283_v54 = vmul.f32 %v488_v30, %v488_v30  ;;  %v287_v55 = vsel %vm239_vm0, %v282_v44, 0.0 }
  0x2d   : > { %v265_v43 = vadd.f32 %v264_v35, %v263_v38  ;;  %v275_v56 = vadd.f32 %v274_v51, %v273_v47  ;;  %v276_v58 = vsel %vm239_vm0, %v270_v50, 0.0 }
  0x2e   : > { %v288_v61 = vadd.f32 %v287_v55, %v286_v53  ;;  %v289_v62 = vsel %vm239_vm0, %v283_v54, 0.0 }
  0x2f   : > { %489 = vrcp.f32 %v265_v43  ;;  %v277_v63 = vadd.f32 %v276_v58, %v275_v56 }
  0x30   : > { %v290_v2 = vadd.f32 %v289_v62, %v288_v61 }
  0x39   : > { %v490_v3 = vpop.eup %489 }
  0x3a   : > { %v278_v5 = vmul.f32 %v490_v3, %v277_v63  ;;  %v279_v6 = vmul.f32 %v490_v3, %v490_v3 }
  0x3c   : > { %v305_v8 = vadd.f32 %v304_v4, %v278_v5  ;;  %v291_v9 = vmul.f32 %v290_v2, %v279_v6 }
  0x3e   : > { %306 = vst [vmem:[#allocation2] sm:$0x3] %v305_v8  ;;  %v303_v11 = vadd.f32 %v302_v7, %v291_v9 }
  0x40   : > { %v308_v12 = vadd.f32 %v307_v10, %v303_v11 }
  0x42   : > { %309 = vst [vmem:[#allocation3] sm:$0x3] %v308_v12 }
  0x45   : > { %v313_v13 = vld [vmem:[#allocation2] sm:$0x3] }
  0x46   : > { %v314_v14 = vsel %vm239_vm0, %v313_v13, 0.0 }
  0x47   : > { %315 = vadd.xlane.f32.xlu0 %v314_v14 }
  0x49   : > { %v324_v15 = vld [vmem:[#allocation3] sm:$0x3] }
  0x4a   : > { %v325_v16 = vsel %vm239_vm0, %v324_v15, 0.0 }
  0x4b   : > { %326 = vadd.xlane.f32.xlu0 %v325_v16 }
  0xd4   : > { %v316_v17 = vpop.xlane.xlu0 %315 }
  0xd5   : > { %v317_v18 = vrot.slane %v316_v17, 4 }
  0xd7   : > { %v318_v19 = vadd.f32 %v317_v18, %v316_v17 }
  0xd8   : > { %v327_v20 = vpop.xlane.xlu0 %326 }
  0xd9   : > { %v319_v21 = vrot.slane %v318_v19, 2  ;;  %v328_v22 = vrot.slane %v327_v20, 4 }
  0xdb   : > { %v329_v23 = vadd.f32 %v328_v22, %v327_v20  ;;  %v320_v24 = vadd.f32 %v319_v21, %v318_v19 }
  0xdd   : > { %v330_v25 = vrot.slane %v329_v23, 2  ;;  %v321_v26 = vrot.slane %v320_v24, 1 }
  0xdf   : > { %v331_v27 = vadd.f32 %v330_v25, %v329_v23  ;;  %v322_v28 = vadd.f32 %v321_v26, %v320_v24 }
  0xe1   : > { %452 = vpush %v322_v28  ;;  %v332_v29 = vrot.slane %v331_v27, 1 }
  0xe3   : > { %v333_v30 = vadd.f32 %v332_v29, %v331_v27 }
  0xe5   : > { %454 = vpush %v333_v30 }
 0x112   : > { %s453_s21 = spop %452 }
 0x113   : > { %v335_v31 = vstv %s453_s21 }
 0x116   : > { %s455_s25 = spop %454 }
 0x117   : > { %v336_v32 = vstv %s455_s25 }
 0x118   : > { %v338_v33 = vsel %vm337_vm1, %v335_v31, %v336_v32 }
 0x119   : > { %339 = vst [vmem:[%s224_s24] sm:$0x3] %v338_v33 }
 0x11a PF: > { %s12_s11 = sadd.s32 1, %s513_s11   ;;  %s596_s9 = smov %s509_s10 }
 0x11b   : > { %p9_p5 = scmp.ge.s32.totalorder %s12_s11, 4   ;;  %s597_s10 = smov %s599_s12 }
 0x11d   :  { %11 = sbr.rel (!%p9_p5) target bundleno = 2 (0x2), region = 69 }

</bundles_post_ra>
